<compile_context>
chip_gen: v7x
topology: tpu7x:2x2x1
jax: 0.10.0
libtpu: 0.0.40
codegen_flags: <defaults>
</compile_context>

<pallas_src>
import functools

import jax
import jax.numpy as jnp
from jax import lax
from jax.experimental import pallas as pl
from jax.experimental.pallas import tpu as pltpu


def _round_up(v, m):
    return ((v + m - 1) // m) * m


def _pick_row_tile(n):
    # Row tile for streaming adj: as large as practical while a double-buffered
    # bf16 [tm, N_pad] tile stays <= ~8 MiB (comfortably under the 16/32 MiB
    # scoped-VMEM defaults and v7x's 64 MiB physical VMEM).
    tm = min(256, _round_up(n, 8))
    while tm > 8 and 2 * tm * _round_up(n, tm) * 2 > 8 * 1024 * 1024:
        tm //= 2
    return max(8, (tm // 8) * 8)


def _proj1_kernel(x_ref, w1_ref, d_ref, y1_ref):
    # Y1 tile = d_tile * (X_tile @ W1)
    xw = jnp.dot(x_ref[...], w1_ref[...], preferred_element_type=jnp.float32)
    y1_ref[...] = d_ref[...] * xw


def _agg1_kernel(adj_ref, y1_ref, d_ref, b1_ref, w2_ref, y2_ref, *, tm):
    i = pl.program_id(0)
    row0 = pl.multiple_of(i * tm, tm)
    # adj is streamed as bf16 (exact for 0/1 weights); upcast per-tile so the
    # accumulation path stays f32.
    a = adj_ref[...].astype(jnp.float32)                       # [tm, Np]
    agg = jnp.dot(a, y1_ref[...], preferred_element_type=jnp.float32)  # [tm, Hp]
    y1_self = y1_ref[pl.ds(row0, tm), :]                       # slice of resident Y1
    h1 = jnp.maximum(d_ref[...] * (agg + y1_self) + b1_ref[...], 0.0)
    # (dropout: eval mode -> identity)
    y2_ref[...] = d_ref[...] * jnp.dot(h1, w2_ref[...],
                                       preferred_element_type=jnp.float32)


def _agg2_kernel(adj_ref, y2_ref, d_ref, b2_ref, o_ref, *, tm, inv_temp):
    i = pl.program_id(0)
    row0 = pl.multiple_of(i * tm, tm)
    a = adj_ref[...].astype(jnp.float32)                       # [tm, Np]
    agg = jnp.dot(a, y2_ref[...], preferred_element_type=jnp.float32)  # [tm, Cp]
    y2_self = y2_ref[pl.ds(row0, tm), :]
    logits = (d_ref[...] * (agg + y2_self) + b2_ref[...]) * inv_temp
    # log_softmax over the (lane-padded) class axis; padded classes carry a
    # -1e30 bias so they contribute exp(.) == 0 and never win the max.
    m = jnp.max(logits, axis=1, keepdims=True)
    lse = jnp.log(jnp.sum(jnp.exp(logits - m), axis=1, keepdims=True)) + m
    o_ref[...] = (logits - lse).astype(o_ref.dtype)


def cog_forward(x, adj, w1, b1, w2, b2, temp=0.2):
    """CoG.forward(x, adj): 2-layer GCN classifier (model_s) on dense adj."""
    n, f = x.shape
    nhid = w1.shape[1]
    nclass = w2.shape[1]
    hp = _round_up(nhid, 128)
    cp = _round_up(nclass, 128)
    tm = _pick_row_tile(n)
    np_ = _round_up(n, tm)
    n_tiles = np_ // tm
    pad_n = np_ - n

    # --- normalization vectors (f32, from the original adjacency) ---------
    # gcn_norm with unit self-loops: deg = rowsum(adj) + 1 (adj is symmetric,
    # so column degrees == row degrees).
    deg = jnp.sum(adj.astype(jnp.float32), axis=1) + 1.0
    d = lax.rsqrt(deg)
    d = jnp.pad(d, (0, pad_n), constant_values=1.0).reshape(np_, 1)

    # --- pad / cast operands ----------------------------------------------
    # adj is the only O(N^2) array: stream it in bf16 (0/1 values are exact;
    # weighted adjacencies would lose a little precision here).
    adj_p = jnp.pad(adj, ((0, pad_n), (0, pad_n))).astype(jnp.bfloat16)
    x_p = jnp.pad(x.astype(jnp.float32), ((0, pad_n), (0, 0)))
    w1_p = jnp.pad(w1.astype(jnp.float32), ((0, 0), (0, hp - nhid)))
    b1_p = jnp.pad(b1.astype(jnp.float32), (0, hp - nhid)).reshape(1, hp)
    w2_p = jnp.pad(w2.astype(jnp.float32),
                   ((0, hp - nhid), (0, cp - nclass)))
    b2_p = jnp.pad(b2.astype(jnp.float32), (0, cp - nclass),
                   constant_values=-1e30).reshape(1, cp)

    cparams = pltpu.CompilerParams(
        dimension_semantics=("parallel",),        # row tiles independent; 2 TCs on v7x
        vmem_limit_bytes=48 * 1024 * 1024,
    )

    row_tile = lambda i: (i, 0)
    resident = lambda i: (0, 0)

    # --- kernel 1: Y1 = d * (X @ W1) ---------------------------------------
    y1 = pl.pallas_call(
        _proj1_kernel,
        out_shape=jax.ShapeDtypeStruct((np_, hp), jnp.float32),
        grid=(n_tiles,),
        in_specs=[
            pl.BlockSpec((tm, f), row_tile),      # X row tile
            pl.BlockSpec((f, hp), resident),      # W1 (resident)
            pl.BlockSpec((tm, 1), row_tile),      # d row tile
        ],
        out_specs=pl.BlockSpec((tm, hp), row_tile),
        compiler_params=cparams,
    )(x_p, w1_p, d)

    # --- kernel 2: layer-1 aggregation + ReLU, fused layer-2 projection ----
    y2 = pl.pallas_call(
        functools.partial(_agg1_kernel, tm=tm),
        out_shape=jax.ShapeDtypeStruct((np_, cp), jnp.float32),
        grid=(n_tiles,),
        in_specs=[
            pl.BlockSpec((tm, np_), row_tile),    # adj row tile (bf16, streamed)
            pl.BlockSpec((np_, hp), resident),    # Y1 (resident, sliced in-kernel)
            pl.BlockSpec((tm, 1), row_tile),      # d row tile
            pl.BlockSpec((1, hp), resident),      # b1
            pl.BlockSpec((hp, cp), resident),     # W2 (resident)
        ],
        out_specs=pl.BlockSpec((tm, cp), row_tile),
        compiler_params=cparams,
    )(adj_p, y1, d, b1_p, w2_p)

    # --- kernel 3: layer-2 aggregation + temperature log-softmax -----------
    out = pl.pallas_call(
        functools.partial(_agg2_kernel, tm=tm, inv_temp=float(1.0 / temp)),
        out_shape=jax.ShapeDtypeStruct((np_, cp), jnp.float32),
        grid=(n_tiles,),
        in_specs=[
            pl.BlockSpec((tm, np_), row_tile),    # adj row tile (bf16, streamed)
            pl.BlockSpec((np_, cp), resident),    # Y2 (resident, sliced in-kernel)
            pl.BlockSpec((tm, 1), row_tile),      # d row tile
            pl.BlockSpec((1, cp), resident),      # b2 (padded classes = -1e30)
        ],
        out_specs=pl.BlockSpec((tm, cp), row_tile),
        compiler_params=cparams,
    )(adj_p, y2, d, b2_p)

    # forward_classifier returns logit[:n_real]; n_real == n here.  Also drop
    # the lane padding of the class axis.
    return out[:n, :nclass]


def _reference(x, adj, w1, b1, w2, b2, temp=0.2):
    a = adj + jnp.eye(adj.shape[0], dtype=adj.dtype)
    d_inv_sqrt = 1.0 / jnp.sqrt(jnp.sum(a, axis=1))
    a_hat = d_inv_sqrt[:, None] * a * d_inv_sqrt[None, :]
    h1 = jnp.maximum(a_hat @ (x @ w1) + b1, 0.0)
    h2 = a_hat @ (h1 @ w2) + b2
    return jax.nn.log_softmax(h2 / temp, axis=1)


if __name__ == "__main__":
    # Small shapes consistent with the module: N nodes, nfeat features,
    # nhid hidden units, nclass classes.
    N, NFEAT, NHID, NCLASS = 16, 32, 32, 8

    key = jax.random.PRNGKey(0)
    kx, kadj, kw1, kw2 = jax.random.split(key, 4)

    x = jax.random.normal(kx, (N, NFEAT), dtype=jnp.float32)

    # Symmetric binary adjacency with zero diagonal.
    upper = (jax.random.uniform(kadj, (N, N)) < 0.3).astype(jnp.float32)
    adj = jnp.triu(upper, k=1)
    adj = adj + adj.T

    # Deterministic GCNConv parameters (glorot-ish scale), biases zero.
    w1 = jax.random.normal(kw1, (NFEAT, NHID), dtype=jnp.float32) * (1.0 / jnp.sqrt(NFEAT))
    b1 = jnp.zeros((NHID,), dtype=jnp.float32)
    w2 = jax.random.normal(kw2, (NHID, NCLASS), dtype=jnp.float32) * (1.0 / jnp.sqrt(NHID))
    b2 = jnp.zeros((NCLASS,), dtype=jnp.float32)

    out = cog_forward(x, adj, w1, b1, w2, b2)
    out = jax.block_until_ready(out)

    ref = _reference(x, adj, w1, b1, w2, b2)
    assert out.shape == (N, NCLASS)
    assert jnp.allclose(out, ref, atol=1e-4, rtol=1e-4), "mismatch vs reference"

    print("KERNEL_OK")
</pallas_src>

<mosaic_0001>
module attributes {stable_mosaic.version = 11 : i64} {
  func.func @_proj1_kernel(%arg0: i32, %arg1: memref<16x32xf32, #tpu.memory_space<vmem>>, %arg2: memref<32x128xf32, #tpu.memory_space<vmem>>, %arg3: memref<16x1xf32, #tpu.memory_space<vmem>>, %arg4: memref<16x128xf32, #tpu.memory_space<vmem>>) attributes {dimension_semantics = [#tpu.dimension_semantics<parallel>], iteration_bounds = array<i64: 1>, scalar_prefetch = 0 : i64, scratch_operands = 0 : i64, tpu.core_type = #tpu.core_type<tc>, window_params = [{transform_indices = @transform_0, window_bounds = array<i64: 16, 32>}, {pipeline_mode = #tpu.pipeline_mode<synchronous>, transform_indices = @transform_1, window_bounds = array<i64: 32, 128>}, {transform_indices = @transform_2, window_bounds = array<i64: 16, 1>}, {transform_indices = @transform_3, window_bounds = array<i64: 16, 128>}]} {
    %c0 = arith.constant 0 : index
    %c0_0 = arith.constant 0 : index
    %0 = vector.load %arg1[%c0, %c0_0] : memref<16x32xf32, #tpu.memory_space<vmem>>, vector<16x32xf32>
    %c0_1 = arith.constant 0 : index
    %c0_2 = arith.constant 0 : index
    %1 = vector.load %arg2[%c0_1, %c0_2] : memref<32x128xf32, #tpu.memory_space<vmem>>, vector<32x128xf32>
    %cst = arith.constant dense<0.000000e+00> : vector<16x128xf32>
    %2 = tpu.matmul %0, %1, %cst {dimension_numbers = #tpu.dot_dimension_numbers<[1], [0], [0], [1], [0, 0, 1, 1], [], []>} : vector<16x32xf32>, vector<32x128xf32>, vector<16x128xf32> -> vector<16x128xf32>
    %c0_3 = arith.constant 0 : index
    %c0_4 = arith.constant 0 : index
    %3 = vector.load %arg3[%c0_3, %c0_4] : memref<16x1xf32, #tpu.memory_space<vmem>>, vector<16x1xf32>
    %4 = vector.broadcast %3 : vector<16x1xf32> to vector<16x128xf32>
    %5 = arith.mulf %4, %2 : vector<16x128xf32>
    %c0_5 = arith.constant 0 : index
    %c0_6 = arith.constant 0 : index
    %6 = vector.load %arg4[%c0_5, %c0_6] : memref<16x128xf32, #tpu.memory_space<vmem>>, vector<16x128xf32>
    tpu.vector_store %arg4[%c0_5, %c0_6], %5 {strides = array<i32>} : memref<16x128xf32, #tpu.memory_space<vmem>>, vector<16x128xf32>,
    return
  }
  func.func @transform_0(%arg0: i32) -> (i32, i32) {
    %c0_i32 = arith.constant 0 : i32
    %c0_i32_0 = arith.constant 0 : i32
    return %arg0, %c0_i32 : i32, i32
  }
  func.func @transform_1(%arg0: i32) -> (i32, i32) {
    %c0_i32 = arith.constant 0 : i32
    %c0_i32_0 = arith.constant 0 : i32
    %c0_i32_1 = arith.constant 0 : i32
    return %c0_i32, %c0_i32_0 : i32, i32
  }
  func.func @transform_2(%arg0: i32) -> (i32, i32) {
    %c0_i32 = arith.constant 0 : i32
    %c0_i32_0 = arith.constant 0 : i32
    return %arg0, %c0_i32 : i32, i32
  }
  func.func @transform_3(%arg0: i32) -> (i32, i32) {
    %c0_i32 = arith.constant 0 : i32
    %c0_i32_0 = arith.constant 0 : i32
    return %arg0, %c0_i32 : i32, i32
  }
}

</mosaic_0001>

<bundles_post_ra>
// kernel: tpu_custom_call.1
= control target key start
LH: loop header
LB: loop body
LE: loop exit
PB: predicated region body
PF: predicated region fallthrough
CT: control target
= control target key end

     0   :  { %8 = vsyncpa [#allocation3], 0  ;;  %s300_s0 = inlined_call_operand.vmem [shape: f32[16,32], index: 0, kind: input, shape index: {}]   ;;  %s301_s1 = inlined_call_operand.hbm [shape: f32[32,128], index: 1, kind: input, shape index: {}]   ;;  %s302_s2 = inlined_call_operand.vmem [shape: f32[16,1], index: 2, kind: input, shape index: {}]   ;;  %s303_s3 = inlined_call_operand.hbm [shape: f32[16,128], index: 3, kind: output, shape index: {}]  }
   0x1   :  { %9 = vsyncpa [#allocation4], 0  ;;  %s231_s12 = smov [#allocation2]   ;;  %s183_s16 = scalar_lea.hbm %s301_s1, 512 }
   0x2   :  { %s17_s13 = sshll.u32 %s231_s12, 4  ;;  %p184_p0 = scmp.ne.s32.totalorder %s301_s1, %s183_s16  ;;  %s18_s13 = int_to_ptr.vmem [resolvable:$true] %s17_s13 }
   0x3   :  { %p187_p1 = scmp.lt.u32.totalorder %s183_s16, %s301_s1 }
   0x5   :  { %p189_p2 = pnand %p187_p1, %p184_p0 }
   0x7   :  { %192 = shalt.err (!%p189_p2)
}
   0x8   :  { %s193_s21 = scalar_lea.vmem %s18_s13, 512  ;;  %p198_p4 = scmp.lt.s32.totalorder %s18_s13, %s18_s13 }
   0x9   :  { %p194_p3 = scmp.ne.s32.totalorder %s18_s13, %s193_s21  ;;  %p199_p5 = scmp.lt.s32.totalorder %s193_s21, %s193_s21 }
   0xb   :  { %p200_p6 = por %p199_p5, %p198_p4 }
   0xd   :  { %p201_p7 = pnand %p200_p6, %p194_p3 }
   0xf   :  { %204 = shalt.err (!%p201_p7)
}
  0x10   :  { %s232_s22 = smov 128   ;;  %s233_s23 = smov 8  }
  0x11   :  { %23 = dma.hbm_to_vmem [thread:$0]  %s301_s1, 512, %s18_s13, [#allocation3], %s232_s22, %s232_s22, %s233_s23  }
  0x12   :  { %227 = dma.done.wait [#allocation3], 512  }
  0x13   :  { %228 = vsyncadd [#allocation3], 4294966784  ;;  %v234_v0 = vmov 0   ;;  %vm35_vm0 = vcmask 261120   ;;  %v31_v1 = vld [vmem:[#allocation2] sm:$0xff]  ;;  %v32_v2 = vld [vmem:[#allocation2 + $0x8] sm:$0xff] }
  0x14   :  { %182 = vset.pattern.permute.xlu0 %v234_v0  ;;  %v33_v3 = vld [vmem:[#allocation2 + $0x10] sm:$0xff]  ;;  %v169_v4 = vpack.c.bf16 %v32_v2, %v31_v1  ;;  %v34_v5 = vld [vmem:[#allocation2 + $0x18] sm:$0xff]  ;;  %v29_v6 = vld [vmem:[%s300_s0] sm:$0xff]  ;;  %s235_s6 = smov [#allocation5]  }
  0x15   :  { %v173_v7 = vpack.c.bf16 %v34_v5, %v33_v3  ;;  %166 = vmatprep.mubr.msk.f32.mxu0 %vm35_vm0, %v29_v6  ;;  %v117_v8 = vld [vmem:[%s302_s2] sm:$0xff]  ;;  %v118_v9 = vld [vmem:[%s302_s2 + $0x8] sm:$0xff]  ;;  %s138_s7 = sshll.u32 %s235_s6, 4  ;;  %s139_s7 = int_to_ptr.vmem [resolvable:$true] %s138_s7 }
  0x16   :  { %170 = vmatprep.subr.bf16.mxu0 %v169_v4  ;;  %121 = vperm.xlu0 %182, %v117_v8   ;;  %v30_v10 = vld [vmem:[%s300_s0 + $0x8] sm:$0xff]  ;;  %s205_s2 = scalar_lea.vmem %s139_s7, 256  ;;  %p210_p9 = scmp.lt.s32.totalorder %s139_s7, %s139_s7 }
  0x17   :  { %172 = vmatpush3.bf16.msra.mxu0 %v169_v4  ;;  %p206_p8 = scmp.ne.s32.totalorder %s139_s7, %s205_s2  ;;  %p211_p10 = scmp.lt.s32.totalorder %s205_s2, %s205_s2 }
  0x18   :  { %174 = vmatprep.subr.bf16.mxu0 %v173_v7 }
  0x19   :  { %p212_p11 = por %p211_p10, %p210_p9 }
  0x1a   :  { %126 = vperm.xlu0 %182, %v118_v9  }
  0x1b   :  { %176 = vmatpush3.bf16.msra.mxu0 %v173_v7  ;;  %p213_p12 = pnand %p212_p11, %p206_p8 }
  0x1e   :  { %167 = vmatmul.mubr.msk.f32.vlgmr.msra.gmra.mrb[0].mxu0 %vm35_vm0, %v30_v10 }
  0x95   :  { %v122_v11 = vpop.permute.xlu0 %121 }
  0x99   :  { %v127_v12 = vpop.permute.xlu0 %126 }
  0xf1   :  { %v168_v13 = vpop.f32.mrb[0].mxu0 }
  0xf2   :  { %v130_v14 = vmul.f32 %v168_v13, %v127_v12  ;;  %v108_v15 = vpop.f32.mrb[1].mxu0 }
  0xf3   :  { %v129_v16 = vmul.f32 %v122_v11, %v108_v15 }
  0xf4   :  { %132 = vst [vmem:[#allocation5 + $0x8] sm:$0xff] %v130_v14 }
  0xf5   :  { %131 = vst [vmem:[#allocation5] sm:$0xff] %v129_v16 }
  0xf6   :  { %216 = shalt.err (!%p213_p12)
}
  0xf7   :  { %s217_s9 = scalar_lea.hbm %s303_s3, 256 }
  0xf8   :  { %p218_p13 = scmp.ne.s32.totalorder %s303_s3, %s217_s9  ;;  %p221_p0 = scmp.lt.u32.totalorder %s217_s9, %s303_s3 }
  0xfa   :  { %p223_p1 = pnand %p221_p0, %p218_p13 }
  0xfc   :  { %226 = shalt.err (!%p223_p1)
}
  0xfd   :  { %144 = dma.vmem_to_hbm [thread:$0]  %s139_s7, 256, %s303_s3, [#allocation4], %s232_s22, %s232_s22, %s233_s23  }
  0xfe   :  { %229 = dma.done.wait [#allocation4], 256  }
  0xff   :  { %230 = vsyncadd [#allocation4], 4294967040 }
 0x100   :  { %148 = vsyncpa [#allocation3], 1 }
 0x101   :  { %149 = vsyncpa [#allocation4], 1 }

</bundles_post_ra>
